<compile_context>
chip_gen: v6e
topology: v6e:2x2x1
jax: 0.10.0
libtpu: 0.0.40
codegen_flags: <defaults>
</compile_context>

<pallas_src>
import functools

import jax
import jax.numpy as jnp
from jax.experimental import pallas as pl
from jax.experimental.pallas import tpu as pltpu


# Scoped-VMEM limit requested from Mosaic.  v5e's default scoped limit is only
# 16 MiB (of 128 MiB physical) and silently caps usable tile sizes; 48 MiB is
# comfortably below v7x's 64 MiB physical per-TensorCore VMEM and far below
# v5e/v6e's 128 MiB, so it is safe on every generation.
_VMEM_LIMIT_BYTES = 48 * 1024 * 1024
# Portion of that limit budgeted when auto-sizing the batch tile (the rest is
# headroom for compiler-managed temporaries / spills).
_VMEM_TILE_BUDGET_BYTES = 36 * 1024 * 1024

# Flipped to False the first time the lane-dense output layout fails to lower
# (the sublane->lane fold reshape is the only toolchain-dependent op here);
# we then permanently fall back to the plain (batch, num_outputs) layout.
_LANE_DENSE_SUPPORTED = True


def _fa_mlp_kernel(x_ref, w1t_ref, w2t_ref, out_ref):
    """One batch tile of: softmax(sigmoid(x @ W1.T) @ W2.T, axis=-1).

    w1t_ref / w2t_ref hold the already-transposed weights, (num_inputs,
    num_hidden) and (num_hidden, num_outputs), so both matmuls are plain
    (1, 0) contractions on the MXU (no per-grid-step transpose/XLU work).
    """
    w1t = w1t_ref[...]
    w2t = w2t_ref[...]
    x = x_ref[...]
    if x.dtype != w1t.dtype:
        # Opt-in low-precision MXU path: cast after the DMA (never a second
        # HBM pass over X in the wrapper).
        x = x.astype(w1t.dtype)

    # Hidden layer: MXU matmul (f32 accumulation) + f32 sigmoid.
    h = jax.nn.sigmoid(jnp.dot(x, w1t, preferred_element_type=jnp.float32))

    # Output layer: MXU matmul + numerically stable row softmax, all in f32.
    logits = jnp.dot(h.astype(w2t.dtype), w2t, preferred_element_type=jnp.float32)
    logits = logits - jnp.max(logits, axis=-1, keepdims=True)
    e = jnp.exp(logits)
    probs = e / jnp.sum(e, axis=-1, keepdims=True)  # exact divide (keeps 1e-5)

    # Lane-dense layout: out_ref is (rows // group, group * num_outputs) with
    # group * num_outputs == 128 -- a pure row-major refold of
    # (rows, num_outputs) that turns the writeback into full-width unmasked
    # stores and a dense HBM DMA.  In the plain layout this reshape is a no-op.
    out_ref[...] = probs.reshape(out_ref.shape).astype(out_ref.dtype)


@functools.partial(jax.jit, static_argnames=("tile_rows", "group"))
def _fa_mlp_call(x2, w1t, w2t, *, tile_rows, group):
    batch, num_inputs = x2.shape
    num_hidden, num_outputs = w2t.shape

    grid = (pl.cdiv(batch, tile_rows),)

    if group > 1:
        out_shape = jax.ShapeDtypeStruct(
            (batch // group, group * num_outputs), jnp.float32)
        out_spec = pl.BlockSpec(
            (tile_rows // group, group * num_outputs), lambda i: (i, 0))
    else:
        out_shape = jax.ShapeDtypeStruct((batch, num_outputs), jnp.float32)
        out_spec = pl.BlockSpec((tile_rows, num_outputs), lambda i: (i, 0))

    return pl.pallas_call(
        _fa_mlp_kernel,
        out_shape=out_shape,
        grid=grid,
        in_specs=[
            # X: streamed / double-buffered per batch tile (dominant HBM cost).
            pl.BlockSpec((tile_rows, num_inputs), lambda i: (i, 0)),
            # Weights: tiny, constant index_map => fetched once and re-used
            # across every grid step.
            pl.BlockSpec((num_inputs, num_hidden), lambda i: (0, 0)),
            pl.BlockSpec((num_hidden, num_outputs), lambda i: (0, 0)),
        ],
        out_specs=out_spec,
        compiler_params=pltpu.CompilerParams(
            # Independent batch tiles: shard across both TensorCores on v7x
            # (no-op on single-TC v5e/v6e).
            dimension_semantics=("parallel",),
            # Raise the scoped-VMEM limit so large batch tiles are accepted
            # (v5e defaults to only 16 MiB of scoped VMEM).
            vmem_limit_bytes=_VMEM_LIMIT_BYTES,
        ),
    )(x2, w1t, w2t)


def _pick_tile_rows(batch, block_batch, num_inputs, num_hidden, num_outputs,
                    group, x_itemsize):
    """Largest aligned batch tile that fits the per-tile VMEM budget."""
    lane_pad = lambda n: ((max(n, 1) + 127) // 128) * 128
    # Generous per-batch-row VMEM estimate: double-buffered X block, double-
    # buffered output block, plus f32 temporaries (h / logits / exp / probs,
    # lane-padded to 128).
    per_row = 2 * lane_pad(num_inputs) * x_itemsize
    per_row += 2 * 4 * (128 if group > 1 else lane_pad(num_outputs)) // group
    per_row += 6 * 4 * lane_pad(max(num_hidden, num_outputs))
    vmem_rows = max(_VMEM_TILE_BUDGET_BYTES // per_row, 8)

    tile_rows = min(batch, block_batch, vmem_rows)
    if tile_rows >= batch:
        return batch                       # single tile: full-array block
    # Multi-tile blocks: rows must be a multiple of 8 sublanes (16 if X is a
    # 2-byte dtype, which packs 2 rows per sublane) and of `group` so every
    # output block folds whole row groups.
    align = 8 * group
    if x_itemsize == 2:
        align = max(align, 16)
    tile_rows = max((tile_rows // align) * align, align)
    return batch if tile_rows >= batch else tile_rows


def fa_mlp_forward(x, w1, w2, *, block_batch=8192, matmul_dtype=None,
                   lane_dense_out=None):
    """Feedback-Alignment MLP forward pass (fused Pallas TPU kernel).

    Computes softmax(sigmoid(X.reshape(-1, num_inputs) @ W1.T) @ W2.T, axis=1),
    i.e. the forward pass of FeedbackAlignmentMultiLayerPerceptron with the
    default 'sigmoid' activation and bias=False.  The fixed random feedback
    weights are backward-only and do not appear in the forward computation.

    Args:
      x:  input batch, any leading shape; reshaped to (-1, num_inputs).
      w1: (num_hidden, num_inputs)  weight, PyTorch nn.Linear layout.
      w2: (num_outputs, num_hidden) weight, PyTorch nn.Linear layout.
      block_batch: upper bound on rows per batch tile.  The actual tile is
        additionally clamped by a VMEM budget and alignment; the 8192 default
        keeps the ~0.35us per-grid-step overhead well below per-tile HBM time.
      matmul_dtype: optional MXU operand dtype (e.g. jnp.bfloat16).  Weights
        are cast wrapper-side (tiny); X is cast inside the kernel so no extra
        HBM pass is made over it.  Pass X already in bf16 to actually halve
        the dominant HBM read.  Elementwise math stays f32 either way.
      lane_dense_out: False disables the lane-dense (rows, 128) output layout;
        None/True uses it whenever num_outputs divides 128 and the batch is a
        multiple of 128 // num_outputs.

    Returns:
      (batch, num_outputs) float32 softmax probabilities.
    """
    global _LANE_DENSE_SUPPORTED

    num_hidden, num_inputs = w1.shape
    num_outputs = w2.shape[0]

    x2 = x.reshape(-1, num_inputs)         # matches the module's X.reshape(...)
    batch = x2.shape[0]
    x_itemsize = jnp.dtype(x2.dtype).itemsize

    mm_dtype = jnp.dtype(matmul_dtype) if matmul_dtype is not None else x2.dtype
    w1t = w1.T.astype(mm_dtype)            # (num_inputs, num_hidden)  - one tiny
    w2t = w2.T.astype(mm_dtype)            # (num_hidden, num_outputs) - XLA transpose per call

    # Lane-dense output grouping: fold `group` consecutive batch rows into one
    # 128-lane output row (group * num_outputs == 128).
    group = 1
    if (lane_dense_out is not False and _LANE_DENSE_SUPPORTED
            and 0 < num_outputs < 128 and 128 % num_outputs == 0
            and batch % (128 // num_outputs) == 0):
        group = 128 // num_outputs

    if group > 1:
        tile_rows = _pick_tile_rows(batch, block_batch, num_inputs, num_hidden,
                                    num_outputs, group, x_itemsize)
        try:
            out = _fa_mlp_call(x2, w1t, w2t, tile_rows=tile_rows, group=group)
            return out.reshape(batch, num_outputs)
        except Exception:
            # Sublane->lane fold reshape not supported by this Mosaic build;
            # fall back (permanently) to the plain output layout.
            _LANE_DENSE_SUPPORTED = False
            group = 1

    tile_rows = _pick_tile_rows(batch, block_batch, num_inputs, num_hidden,
                                num_outputs, group, x_itemsize)
    return _fa_mlp_call(x2, w1t, w2t, tile_rows=tile_rows, group=group)


if __name__ == "__main__":
    num_inputs, num_hidden, num_outputs = 64, 32, 16
    batch = 8

    key = jax.random.PRNGKey(0)
    kx, kw1, kw2, kf1, kf2, kbig = jax.random.split(key, 6)

    # Input as (batch, 8, 8) "images"; the wrapper reshapes to (-1, num_inputs).
    x = jax.random.normal(kx, (batch, 8, 8), dtype=jnp.float32)

    # nn.Linear-style uniform(-1/sqrt(fan_in), 1/sqrt(fan_in)) init.
    b1 = num_inputs ** -0.5
    b2 = num_hidden ** -0.5
    w1 = jax.random.uniform(kw1, (num_hidden, num_inputs), jnp.float32, -b1, b1)
    w2 = jax.random.uniform(kw2, (num_outputs, num_hidden), jnp.float32, -b2, b2)

    # Fixed random feedback weights: module parameters that only enter the
    # backward pass (kept for parity with the PyTorch parameter set).
    feedback_weight1 = jax.random.normal(kf1, (num_hidden, num_outputs), jnp.float32)
    feedback_weight2 = jax.random.normal(kf2, (num_outputs, num_hidden), jnp.float32)

    def reference(xv):
        xr = xv.reshape(-1, num_inputs)
        h = jax.nn.sigmoid(xr @ w1.T)
        return jax.nn.softmax(h @ w2.T, axis=1)

    # 1) Small batch, single grid step (lane-dense output path when supported).
    y = jax.block_until_ready(fa_mlp_forward(x, w1, w2))
    assert y.shape == (batch, num_outputs)
    assert jnp.allclose(y, reference(x), atol=1e-5, rtol=1e-5)
    assert jnp.allclose(jnp.sum(y, axis=1), jnp.ones((batch,)), atol=1e-5)

    # 2) Multi-tile grid with a partial last tile (200 rows, 64-row tiles).
    big = 200
    xb = jax.random.normal(kbig, (big, num_inputs), dtype=jnp.float32)
    yb = jax.block_until_ready(fa_mlp_forward(xb, w1, w2, block_batch=64))
    assert yb.shape == (big, num_outputs)
    assert jnp.allclose(yb, reference(xb), atol=1e-5, rtol=1e-5)
    assert jnp.allclose(jnp.sum(yb, axis=1), jnp.ones((big,)), atol=1e-5)

    # 3) Plain (non lane-dense) output layout, exercised explicitly.
    yn = jax.block_until_ready(fa_mlp_forward(x, w1, w2, lane_dense_out=False))
    assert jnp.allclose(yn, reference(x), atol=1e-5, rtol=1e-5)

    print("KERNEL_OK")
</pallas_src>

<mosaic_0001>
module attributes {stable_mosaic.version = 11 : i64} {
  func.func @_fa_mlp_kernel(%arg0: i32, %arg1: memref<8x64xf32, #tpu.memory_space<vmem>>, %arg2: memref<64x32xf32, #tpu.memory_space<vmem>>, %arg3: memref<32x16xf32, #tpu.memory_space<vmem>>, %arg4: memref<1x128xf32, #tpu.memory_space<vmem>>) attributes {dimension_semantics = [#tpu.dimension_semantics<parallel>], iteration_bounds = array<i64: 1>, scalar_prefetch = 0 : i64, scratch_operands = 0 : i64, tpu.core_type = #tpu.core_type<tc>, window_params = [{transform_indices = @transform_0, window_bounds = array<i64: 8, 64>}, {pipeline_mode = #tpu.pipeline_mode<synchronous>, transform_indices = @transform_1, window_bounds = array<i64: 64, 32>}, {pipeline_mode = #tpu.pipeline_mode<synchronous>, transform_indices = @transform_2, window_bounds = array<i64: 32, 16>}, {transform_indices = @transform_3, window_bounds = array<i64: 1, 128>}]} {
    %c0 = arith.constant 0 : index
    %c0_0 = arith.constant 0 : index
    %0 = vector.load %arg2[%c0, %c0_0] : memref<64x32xf32, #tpu.memory_space<vmem>>, vector<64x32xf32>
    %c0_1 = arith.constant 0 : index
    %c0_2 = arith.constant 0 : index
    %1 = vector.load %arg3[%c0_1, %c0_2] : memref<32x16xf32, #tpu.memory_space<vmem>>, vector<32x16xf32>
    %c0_3 = arith.constant 0 : index
    %c0_4 = arith.constant 0 : index
    %2 = vector.load %arg1[%c0_3, %c0_4] : memref<8x64xf32, #tpu.memory_space<vmem>>, vector<8x64xf32>
    %cst = arith.constant dense<0.000000e+00> : vector<8x32xf32>
    %3 = tpu.matmul %2, %0, %cst {dimension_numbers = #tpu.dot_dimension_numbers<[1], [0], [0], [1], [0, 0, 1, 1], [], []>} : vector<8x64xf32>, vector<64x32xf32>, vector<8x32xf32> -> vector<8x32xf32>
    %4 = arith.negf %3 : vector<8x32xf32>
    %5 = math.exp %4 : vector<8x32xf32>
    %cst_5 = arith.constant 1.000000e+00 : f32
    %6 = vector.broadcast %cst_5 : f32 to vector<8x32xf32>
    %7 = arith.addf %6, %5 : vector<8x32xf32>
    %8 = arith.divf %6, %7 : vector<8x32xf32>
    %cst_6 = arith.constant dense<0.000000e+00> : vector<8x16xf32>
    %9 = tpu.matmul %8, %1, %cst_6 {dimension_numbers = #tpu.dot_dimension_numbers<[1], [0], [0], [1], [0, 0, 1, 1], [], []>} : vector<8x32xf32>, vector<32x16xf32>, vector<8x16xf32> -> vector<8x16xf32>
    %cst_7 = arith.constant dense<0xFF800000> : vector<8xf32>
    %10 = vector.multi_reduction <maximumf>, %9, %cst_7 [1] : vector<8x16xf32> to vector<8xf32>
    %11 = vector.shape_cast %10 : vector<8xf32> to vector<8x1xf32>
    %12 = vector.broadcast %11 : vector<8x1xf32> to vector<8x16xf32>
    %13 = arith.subf %9, %12 : vector<8x16xf32>
    %14 = math.exp %13 : vector<8x16xf32>
    %cst_8 = arith.constant dense<0.000000e+00> : vector<8xf32>
    %15 = vector.multi_reduction <add>, %14, %cst_8 [1] : vector<8x16xf32> to vector<8xf32>
    %16 = vector.shape_cast %15 : vector<8xf32> to vector<8x1xf32>
    %17 = vector.broadcast %16 : vector<8x1xf32> to vector<8x16xf32>
    %18 = arith.divf %14, %17 : vector<8x16xf32>
    %19 = vector.shape_cast %18 : vector<8x16xf32> to vector<1x128xf32>
    %c0_9 = arith.constant 0 : index
    %c0_10 = arith.constant 0 : index
    %20 = vector.load %arg4[%c0_9, %c0_10] : memref<1x128xf32, #tpu.memory_space<vmem>>, vector<1x128xf32>
    tpu.vector_store %arg4[%c0_9, %c0_10], %19 {strides = array<i32>} : memref<1x128xf32, #tpu.memory_space<vmem>>, vector<1x128xf32>,
    return
  }
  func.func @transform_0(%arg0: i32) -> (i32, i32) {
    %c0_i32 = arith.constant 0 : i32
    %c0_i32_0 = arith.constant 0 : i32
    return %arg0, %c0_i32 : i32, i32
  }
  func.func @transform_1(%arg0: i32) -> (i32, i32) {
    %c0_i32 = arith.constant 0 : i32
    %c0_i32_0 = arith.constant 0 : i32
    %c0_i32_1 = arith.constant 0 : i32
    return %c0_i32, %c0_i32_0 : i32, i32
  }
  func.func @transform_2(%arg0: i32) -> (i32, i32) {
    %c0_i32 = arith.constant 0 : i32
    %c0_i32_0 = arith.constant 0 : i32
    %c0_i32_1 = arith.constant 0 : i32
    return %c0_i32, %c0_i32_0 : i32, i32
  }
  func.func @transform_3(%arg0: i32) -> (i32, i32) {
    %c0_i32 = arith.constant 0 : i32
    %c0_i32_0 = arith.constant 0 : i32
    return %arg0, %c0_i32 : i32, i32
  }
}

module attributes {stable_mosaic.version = 11 : i64} {
  func.func @_fa_mlp_kernel(%arg0: i32, %arg1: memref<8x64xf32, #tpu.memory_space<vmem>>, %arg2: memref<64x32xf32, #tpu.memory_space<vmem>>, %arg3: memref<32x16xf32, #tpu.memory_space<vmem>>, %arg4: memref<8x16xf32, #tpu.memory_space<vmem>>) attributes {dimension_semantics = [#tpu.dimension_semantics<parallel>], iteration_bounds = array<i64: 1>, scalar_prefetch = 0 : i64, scratch_operands = 0 : i64, tpu.core_type = #tpu.core_type<tc>, window_params = [{transform_indices = @transform_0, window_bounds = array<i64: 8, 64>}, {pipeline_mode = #tpu.pipeline_mode<synchronous>, transform_indices = @transform_1, window_bounds = array<i64: 64, 32>}, {pipeline_mode = #tpu.pipeline_mode<synchronous>, transform_indices = @transform_2, window_bounds = array<i64: 32, 16>}, {transform_indices = @transform_3, window_bounds = array<i64: 8, 16>}]} {
    %c0 = arith.constant 0 : index
    %c0_0 = arith.constant 0 : index
    %0 = vector.load %arg2[%c0, %c0_0] : memref<64x32xf32, #tpu.memory_space<vmem>>, vector<64x32xf32>
    %c0_1 = arith.constant 0 : index
    %c0_2 = arith.constant 0 : index
    %1 = vector.load %arg3[%c0_1, %c0_2] : memref<32x16xf32, #tpu.memory_space<vmem>>, vector<32x16xf32>
    %c0_3 = arith.constant 0 : index
    %c0_4 = arith.constant 0 : index
    %2 = vector.load %arg1[%c0_3, %c0_4] : memref<8x64xf32, #tpu.memory_space<vmem>>, vector<8x64xf32>
    %cst = arith.constant dense<0.000000e+00> : vector<8x32xf32>
    %3 = tpu.matmul %2, %0, %cst {dimension_numbers = #tpu.dot_dimension_numbers<[1], [0], [0], [1], [0, 0, 1, 1], [], []>} : vector<8x64xf32>, vector<64x32xf32>, vector<8x32xf32> -> vector<8x32xf32>
    %4 = arith.negf %3 : vector<8x32xf32>
    %5 = math.exp %4 : vector<8x32xf32>
    %cst_5 = arith.constant 1.000000e+00 : f32
    %6 = vector.broadcast %cst_5 : f32 to vector<8x32xf32>
    %7 = arith.addf %6, %5 : vector<8x32xf32>
    %8 = arith.divf %6, %7 : vector<8x32xf32>
    %cst_6 = arith.constant dense<0.000000e+00> : vector<8x16xf32>
    %9 = tpu.matmul %8, %1, %cst_6 {dimension_numbers = #tpu.dot_dimension_numbers<[1], [0], [0], [1], [0, 0, 1, 1], [], []>} : vector<8x32xf32>, vector<32x16xf32>, vector<8x16xf32> -> vector<8x16xf32>
    %cst_7 = arith.constant dense<0xFF800000> : vector<8xf32>
    %10 = vector.multi_reduction <maximumf>, %9, %cst_7 [1] : vector<8x16xf32> to vector<8xf32>
    %11 = vector.shape_cast %10 : vector<8xf32> to vector<8x1xf32>
    %12 = vector.broadcast %11 : vector<8x1xf32> to vector<8x16xf32>
    %13 = arith.subf %9, %12 : vector<8x16xf32>
    %14 = math.exp %13 : vector<8x16xf32>
    %cst_8 = arith.constant dense<0.000000e+00> : vector<8xf32>
    %15 = vector.multi_reduction <add>, %14, %cst_8 [1] : vector<8x16xf32> to vector<8xf32>
    %16 = vector.shape_cast %15 : vector<8xf32> to vector<8x1xf32>
    %17 = vector.broadcast %16 : vector<8x1xf32> to vector<8x16xf32>
    %18 = arith.divf %14, %17 : vector<8x16xf32>
    %c0_9 = arith.constant 0 : index
    %c0_10 = arith.constant 0 : index
    %19 = vector.load %arg4[%c0_9, %c0_10] : memref<8x16xf32, #tpu.memory_space<vmem>>, vector<8x16xf32>
    tpu.vector_store %arg4[%c0_9, %c0_10], %18 {strides = array<i32>} : memref<8x16xf32, #tpu.memory_space<vmem>>, vector<8x16xf32>,
    return
  }
  func.func @transform_0(%arg0: i32) -> (i32, i32) {
    %c0_i32 = arith.constant 0 : i32
    %c0_i32_0 = arith.constant 0 : i32
    return %arg0, %c0_i32 : i32, i32
  }
  func.func @transform_1(%arg0: i32) -> (i32, i32) {
    %c0_i32 = arith.constant 0 : i32
    %c0_i32_0 = arith.constant 0 : i32
    %c0_i32_1 = arith.constant 0 : i32
    return %c0_i32, %c0_i32_0 : i32, i32
  }
  func.func @transform_2(%arg0: i32) -> (i32, i32) {
    %c0_i32 = arith.constant 0 : i32
    %c0_i32_0 = arith.constant 0 : i32
    %c0_i32_1 = arith.constant 0 : i32
    return %c0_i32, %c0_i32_0 : i32, i32
  }
  func.func @transform_3(%arg0: i32) -> (i32, i32) {
    %c0_i32 = arith.constant 0 : i32
    %c0_i32_0 = arith.constant 0 : i32
    return %arg0, %c0_i32 : i32, i32
  }
}

</mosaic_0001>

<bundles_post_ra>
// kernel: _fa_mlp_call.1
= control target key start
LH: loop header
LB: loop body
LE: loop exit
PB: predicated region body
PF: predicated region fallthrough
CT: control target
= control target key end

     0   :  { %v289_v1 = vmov 0.0   ;;  %vm290_vm0 = vmmov 0   ;;  %s357_s0 = inlined_call_operand.vmem [shape: f32[8,64], index: 0, kind: input, shape index: {}]   ;;  %s358_s1 = inlined_call_operand.vmem [shape: f32[64,32], index: 1, kind: input, shape index: {}]   ;;  %s359_s2 = inlined_call_operand.vmem [shape: f32[32,16], index: 2, kind: input, shape index: {}]   ;;  %s360_s3 = inlined_call_operand.hbm [shape: f32[8,16], index: 3, kind: output, shape index: {}]  }
   0x1   :  { %v22_v0 = vld [vmem:[%s358_s1 + $0x38] sm:$0xff]  ;;  %226 = vmatprep.subr.mxu0 %v289_v1  ;;  %v21_v2 = vld [vmem:[%s358_s1 + $0x30] sm:$0xff]  ;;  %242 = vmatprep.mubr.msk.f32.mxu0 %vm290_vm0, %v289_v1  ;;  %v20_v3 = vld [vmem:[%s358_s1 + $0x28] sm:$0xff] }
   0x2   :  { %227 = vmatpush3.msra.mxu0 %v22_v0  ;;  %245 = vmatprep.subr.mxu1 %v289_v1 }
   0x3   :  { %228 = vmatprep.subr.mxu0 %v289_v1  ;;  %253 = vmatprep.mubr.msk.f32.mxu1 %vm290_vm0, %v289_v1 }
   0x4   :  { %8 = vsyncpa [#allocation3], 0  ;;  %229 = vmatpush3.msra.mxu0 %v21_v2  ;;  %v19_v4 = vld [vmem:[%s358_s1 + $0x20] sm:$0xff]  ;;  %v18_v5 = vld [vmem:[%s358_s1 + $0x18] sm:$0xff]  ;;  %vm28_vm1 = vcmask 523264   ;;  %vm108_vm2 = vcmask 261120  }
   0x5   :  { %230 = vmatprep.subr.mxu0 %v289_v1  ;;  %v17_v6 = vld [vmem:[%s358_s1 + $0x10] sm:$0xff]  ;;  %v16_v7 = vld [vmem:[%s358_s1 + $0x8] sm:$0xff]  ;;  %v15_v8 = vld [vmem:[%s358_s1] sm:$0xff]  ;;  %vm182_vm3 = vcmask 130048  }
   0x6   :  { %231 = vmatpush3.msra.mxu0 %v20_v3  ;;  %v27_v9 = vld [vmem:[%s357_s0] sm:$0xff]  ;;  %v26_v10 = vld [vmem:[%s359_s2 + $0x18] sm:$0xff]  ;;  %v25_v11 = vld [vmem:[%s359_s2 + $0x10] sm:$0xff] }
   0x7   :  { %232 = vmatprep.subr.mxu0 %v289_v1  ;;  %246 = vmatpush3.msra.mxu1 %v26_v10  ;;  %v24_v12 = vld [vmem:[%s359_s2 + $0x8] sm:$0xff]  ;;  %v23_v13 = vld [vmem:[%s359_s2] sm:$0xff]  ;;  %s291_s2 = smov [#allocation2]  }
   0x8   :  { %233 = vmatpush3.msra.mxu0 %v19_v4  ;;  %247 = vmatprep.subr.mxu1 %v289_v1  ;;  %s201_s9 = sshll.u32 %s291_s2, 4  ;;  %s202_s9 = int_to_ptr.vmem [resolvable:$true] %s201_s9 }
   0x9   :  { %234 = vmatprep.subr.mxu0 %v289_v1  ;;  %248 = vmatpush3.msra.mxu1 %v25_v11  ;;  %s267_s10 = scalar_lea.vmem %s202_s9, 128  ;;  %p272_p1 = scmp.lt.s32.totalorder %s202_s9, %s202_s9 }
   0xa   :  { %235 = vmatpush3.msra.mxu0 %v18_v5  ;;  %249 = vmatprep.subr.mxu1 %v289_v1  ;;  %p268_p0 = scmp.ne.s32.totalorder %s202_s9, %s267_s10  ;;  %p273_p2 = scmp.lt.s32.totalorder %s267_s10, %s267_s10 }
   0xb   :  { %236 = vmatprep.subr.mxu0 %v289_v1  ;;  %250 = vmatpush3.msra.mxu1 %v24_v12 }
   0xc   :  { %237 = vmatpush3.msra.mxu0 %v17_v6  ;;  %251 = vmatprep.subr.mxu1 %v289_v1  ;;  %p274_p3 = por %p273_p2, %p272_p1 }
   0xd   :  { %238 = vmatprep.subr.mxu0 %v289_v1  ;;  %252 = vmatpush3.msra.mxu1 %v23_v13 }
   0xe   :  { %239 = vmatpush3.msra.mxu0 %v16_v7  ;;  %p275_p4 = pnand %p274_p3, %p268_p0 }
   0xf   :  { %240 = vmatprep.subr.mxu0 %v289_v1 }
  0x10   :  { %241 = vmatpush3.msra.mxu0 %v15_v8 }
  0x11   :  { %243 = vmatmul.mubr.msk.f32.vlgmr.msra.gmra.mxu0 %vm28_vm1, %v27_v9 }
  0xd1   :  { %v98_v14 = vpop.f32.mrf.mxu0 }
  0xd2   :  { %v210_v15 = vmul.f32 -1.442695, %v98_v14 }
  0xd3   :  { %v244_v16 = vpop.f32.mrf.mxu0 }
  0xd4   :  { %259 = vpow2.f32 %v210_v15 }
  0xe1   :  { %v260_v17 = vpop.eup %259 }
  0xe2   :  { %v105_v18 = vadd.f32 1.0, %v260_v17 }
  0xe4   :  { %261 = vrcp.f32 %v105_v18 }
  0xf1   :  { %v262_v19 = vpop.eup %261 }
  0xf2   :  { %254 = vmatmul.mubr.msk.f32.vlgmr.msra.gmra.mxu1 %vm108_vm2, %v262_v19 }
 0x1b2   :  { %v178_v20 = vpop.f32.mrf.mxu1 }
 0x1b3   :  { %v183_v21 = vsel %vm182_vm3, %v178_v20, -inf }
 0x1b4   :  { %184 = vmax.xlane.f32.xlu0 %v183_v21  ;;  %v255_v22 = vpop.f32.mrf.mxu1 }
 0x23d   :  { %v185_v23 = vpop.xlane.xlu0 %184 }
 0x23e   :  { %v186_v24 = vsub.f32 %v178_v20, %v185_v23 }
 0x240   :  { %v187_v25 = vmul.f32 1.442695, %v186_v24 }
 0x242   :  { %263 = vpow2.f32 %v187_v25 }
 0x24f   :  { %v264_v26 = vpop.eup %263 }
 0x250   :  { %v189_v27 = vsel %vm182_vm3, %v264_v26, 0.0 }
 0x251   :  { %190 = vadd.xlane.f32.xlu0 %v189_v27 }
 0x2da   :  { %v191_v28 = vpop.xlane.xlu0 %190 }
 0x2db   :  { %265 = vrcp.f32 %v191_v28 }
 0x2e8   :  { %v266_v29 = vpop.eup %265 }
 0x2e9   :  { %v193_v30 = vmul.f32 %v266_v29, %v264_v26 }
 0x2eb   :  { %194 = vst.msk [vmem:[#allocation2] sm:$0xff] %vm182_vm3, %v193_v30 }
 0x2ec   :  { %278 = shalt.err (!%p275_p4)
}
 0x2ed   :  { %204 = dma.vmem_to_hbm [thread:$0]  %s202_s9, 128, %s360_s3, [#allocation3]  }
 0x2ee   :  { %287 = dma.done.wait [#allocation3], 128  }
 0x2ef   :  { %288 = vsyncadd [#allocation3], 4294967168 }
 0x2f0   :  { %208 = vsyncpa [#allocation3], 1 }

</bundles_post_ra>
